<compile_context>
chip_gen: v7x
topology: tpu7x:2x2x1
jax: 0.10.0
libtpu: 0.0.40
codegen_flags: <defaults>
</compile_context>

<pallas_src>
import functools

import jax
import jax.numpy as jnp
from jax.experimental import pallas as pl
from jax.experimental.pallas import tpu as pltpu

LANE = 128


# ----------------------------------------------------------------------------
# Single fused Pallas kernel: both transposed convs as lane-dense matmuls
# ----------------------------------------------------------------------------
def _fused_convs_kernel(x2_ref, w2_ref, b2_ref, p3_ref, w3_ref, b3_ref,
                        o2_ref, o3_ref, *, scale):
    # 2D transposed conv (stride==kernel): (X @ W + b) * scale, 128-lane output.
    acc2 = jnp.dot(x2_ref[...], w2_ref[...], preferred_element_type=jnp.float32)
    o2_ref[...] = (acc2 + b2_ref[...]) * scale
    # 3D transposed conv: single im2col matmul + fused bias, 128-lane output.
    acc3 = jnp.dot(p3_ref[...], w3_ref[...], preferred_element_type=jnp.float32)
    o3_ref[...] = acc3 + b3_ref[...]


def _fused_convs(x2_flat, w2_pad, b2_pad, patches, w3_pad, b3_pad, scale):
    M2, K2 = x2_flat.shape
    M3, K3 = patches.shape
    assert M2 % 16 == 0 and M3 % 16 == 0  # 2 grid steps, 8-sublane aligned
    bm2, bm3 = M2 // 2, M3 // 2
    kernel = functools.partial(_fused_convs_kernel, scale=scale)
    return pl.pallas_call(
        kernel,
        out_shape=(jax.ShapeDtypeStruct((M2, LANE), jnp.float32),
                   jax.ShapeDtypeStruct((M3, LANE), jnp.float32)),
        grid=(2,),
        in_specs=[
            pl.BlockSpec((bm2, K2), lambda i: (i, 0)),     # x2 rows (split over M)
            pl.BlockSpec((K2, LANE), lambda i: (0, 0)),    # w2 (resident)
            pl.BlockSpec((1, LANE), lambda i: (0, 0)),     # b2 (resident)
            pl.BlockSpec((bm3, K3), lambda i: (i, 0)),     # im2col rows (split over M)
            pl.BlockSpec((K3, LANE), lambda i: (0, 0)),    # w3 (resident)
            pl.BlockSpec((1, LANE), lambda i: (0, 0)),     # b3 (resident)
        ],
        out_specs=(
            pl.BlockSpec((bm2, LANE), lambda i: (i, 0)),
            pl.BlockSpec((bm3, LANE), lambda i: (i, 0)),
        ),
        compiler_params=pltpu.CompilerParams(
            dimension_semantics=("parallel",)),
    )(x2_flat, w2_pad, b2_pad, patches, w3_pad, b3_pad)


# ----------------------------------------------------------------------------
# Model.forward equivalent
# ----------------------------------------------------------------------------
def model_forward(x2, x3d, params):
    scale = 0.578

    # ---- prep 2D path: stride==kernel => pure per-pixel matmul ----
    N2, Cin2, H, W = x2.shape
    Cout2 = params["w2d"].shape[1]
    x2_flat = jnp.transpose(x2, (0, 2, 3, 1)).reshape(N2 * H * W, Cin2)
    w2_flat = params["w2d"].reshape(Cin2, Cout2 * 4)
    w2_pad = jnp.pad(w2_flat, ((0, 0), (0, LANE - Cout2 * 4)))
    b2_pad = jnp.pad(jnp.repeat(params["b2d"], 4),
                     (0, LANE - Cout2 * 4))[None, :]

    # ---- prep 3D path: im2col of zero-padded input, flipped weights ----
    N3, Cin3, D, Hd, Wd = x3d.shape
    Cout3, K = params["w3d"].shape[1], params["w3d"].shape[2]
    Do, Ho, Wo = D + K - 1, Hd + K - 1, Wd + K - 1
    xp = jnp.pad(jnp.transpose(x3d, (0, 2, 3, 4, 1)),
                 ((0, 0), (K - 1, K - 1), (K - 1, K - 1), (K - 1, K - 1), (0, 0)))
    slabs = [xp[:, kd:kd + Do, kh:kh + Ho, kw:kw + Wo, :]
             for kd in range(K) for kh in range(K) for kw in range(K)]
    patches = jnp.concatenate(slabs, axis=-1).reshape(
        N3 * Do * Ho * Wo, K * K * K * Cin3)
    wf = params["w3d"][:, :, ::-1, ::-1, ::-1]                 # flipped weights
    w3_mat = jnp.transpose(wf, (2, 3, 4, 0, 1)).reshape(K * K * K * Cin3, Cout3)
    w3_pad = jnp.pad(w3_mat, ((0, 0), (0, LANE - Cout3)))
    b3_pad = jnp.pad(params["b3d"], (0, LANE - Cout3))[None, :]

    # ---- one fused Pallas launch for both convolutions ----
    o2, o3 = _fused_convs(x2_flat, w2_pad, b2_pad, patches, w3_pad, b3_pad, scale)

    # ---- tiny layout glue back to PyTorch NCHW / NCDHW ----
    x6 = o2[:, :Cout2 * 4].reshape(N2, H, W, Cout2, 2, 2)
    x6 = jnp.transpose(x6, (0, 3, 1, 4, 2, 5)).reshape(N2, Cout2, 2 * H, 2 * W)
    # TODO(synk): in the original module, conv_t3 is applied to x2 itself, which
    # is ill-typed (x2 is 4D with 11 channels but ConvTranspose3d expects a 5D
    # input with 22 channels) and raises a RuntimeError in PyTorch; here the 3D
    # transposed-conv kernel is exercised on a shape-compatible 5D input.
    x7 = o3[:, :Cout3].reshape(N3, Do, Ho, Wo, Cout3)
    x7 = jnp.transpose(x7, (0, 4, 1, 2, 3))
    return x6, x7


# ----------------------------------------------------------------------------
# Pure-JAX references (independent formulations) for correctness checks
# ----------------------------------------------------------------------------
def _ref_ct2d(x, w, b, scale):
    t = jnp.einsum('ncij,cokl->noikjl', x, w)
    N, Cout, H, _, W, _ = t.shape
    return (t.reshape(N, Cout, 2 * H, 2 * W)
            + b[None, :, None, None]) * scale


def _ref_ct3d(x, w, b):
    N, Cin, D, H, W = x.shape
    Cout, K = w.shape[1], w.shape[2]
    xp = jnp.pad(x, ((0, 0), (0, 0), (K - 1, K - 1), (K - 1, K - 1), (K - 1, K - 1)))
    wf = w[:, :, ::-1, ::-1, ::-1]
    Do, Ho, Wo = D + K - 1, H + K - 1, W + K - 1
    out = jnp.zeros((N, Cout, Do, Ho, Wo), jnp.float32)
    for kd in range(K):
        for kh in range(K):
            for kw in range(K):
                out = out + jnp.einsum(
                    'ncdhw,co->nodhw',
                    xp[:, :, kd:kd + Do, kh:kh + Ho, kw:kw + Wo],
                    wf[:, :, kd, kh, kw])
    return out + b[None, :, None, None, None]


if __name__ == "__main__":
    key = jax.random.PRNGKey(0)
    k1, k2, k3, k4, k5, k6 = jax.random.split(key, 6)

    # Inputs (matching the module's x2; small compatible 5D input for conv_t3)
    x2 = jax.random.normal(k1, (3, 11, 8, 8), jnp.float32)
    x3d = jax.random.normal(k2, (2, 22, 4, 4, 4), jnp.float32)

    # Deterministic parameter init (PyTorch ConvTranspose weight layouts)
    params = {
        "w2d": 0.1 * jax.random.normal(k3, (11, 3, 2, 2), jnp.float32),
        "b2d": 0.1 * jax.random.normal(k4, (3,), jnp.float32),
        "w3d": 0.05 * jax.random.normal(k5, (22, 44, 3, 3, 3), jnp.float32),
        "b3d": 0.05 * jax.random.normal(k6, (44,), jnp.float32),
    }

    x6, x7 = jax.jit(model_forward)(x2, x3d, params)
    jax.block_until_ready((x6, x7))

    assert x6.shape == (3, 3, 16, 16), x6.shape
    assert x7.shape == (2, 44, 6, 6, 6), x7.shape

    # Correctness checks vs independent pure-JAX references
    ref6 = _ref_ct2d(x2, params["w2d"], params["b2d"], 0.578)
    ref7 = _ref_ct3d(x3d, params["w3d"], params["b3d"])
    assert jnp.allclose(x6, ref6, atol=1e-4, rtol=1e-4)
    assert jnp.allclose(x7, ref7, atol=1e-4, rtol=1e-4)

    print("KERNEL_OK")
</pallas_src>

<mosaic_0001>
module attributes {stable_mosaic.version = 11 : i64} {
  func.func @_fused_convs_kernel(%arg0: i32, %arg1: memref<96x11xf32, #tpu.memory_space<vmem>>, %arg2: memref<11x128xf32, #tpu.memory_space<vmem>>, %arg3: memref<1x128xf32, #tpu.memory_space<vmem>>, %arg4: memref<216x594xf32, #tpu.memory_space<vmem>>, %arg5: memref<594x128xf32, #tpu.memory_space<vmem>>, %arg6: memref<1x128xf32, #tpu.memory_space<vmem>>, %arg7: memref<96x128xf32, #tpu.memory_space<vmem>>, %arg8: memref<216x128xf32, #tpu.memory_space<vmem>>) attributes {dimension_semantics = [#tpu.dimension_semantics<parallel>], iteration_bounds = array<i64: 2>, scalar_prefetch = 0 : i64, scratch_operands = 0 : i64, tpu.core_type = #tpu.core_type<tc>, window_params = [{transform_indices = @transform_0, window_bounds = array<i64: 96, 11>}, {pipeline_mode = #tpu.pipeline_mode<synchronous>, transform_indices = @transform_1, window_bounds = array<i64: 11, 128>}, {pipeline_mode = #tpu.pipeline_mode<synchronous>, transform_indices = @transform_2, window_bounds = array<i64: 1, 128>}, {transform_indices = @transform_3, window_bounds = array<i64: 216, 594>}, {pipeline_mode = #tpu.pipeline_mode<synchronous>, transform_indices = @transform_4, window_bounds = array<i64: 594, 128>}, {pipeline_mode = #tpu.pipeline_mode<synchronous>, transform_indices = @transform_5, window_bounds = array<i64: 1, 128>}, {transform_indices = @transform_6, window_bounds = array<i64: 96, 128>}, {transform_indices = @transform_7, window_bounds = array<i64: 216, 128>}]} {
    %c0 = arith.constant 0 : index
    %c0_0 = arith.constant 0 : index
    %0 = vector.load %arg1[%c0, %c0_0] : memref<96x11xf32, #tpu.memory_space<vmem>>, vector<96x11xf32>
    %c0_1 = arith.constant 0 : index
    %c0_2 = arith.constant 0 : index
    %1 = vector.load %arg2[%c0_1, %c0_2] : memref<11x128xf32, #tpu.memory_space<vmem>>, vector<11x128xf32>
    %cst = arith.constant dense<0.000000e+00> : vector<96x128xf32>
    %2 = tpu.matmul %0, %1, %cst {dimension_numbers = #tpu.dot_dimension_numbers<[1], [0], [0], [1], [0, 0, 1, 1], [], []>} : vector<96x11xf32>, vector<11x128xf32>, vector<96x128xf32> -> vector<96x128xf32>
    %c0_3 = arith.constant 0 : index
    %c0_4 = arith.constant 0 : index
    %3 = vector.load %arg3[%c0_3, %c0_4] : memref<1x128xf32, #tpu.memory_space<vmem>>, vector<1x128xf32>
    %4 = vector.broadcast %3 : vector<1x128xf32> to vector<96x128xf32>
    %5 = arith.addf %2, %4 : vector<96x128xf32>
    %cst_5 = arith.constant 5.780000e-01 : f32
    %6 = vector.broadcast %cst_5 : f32 to vector<96x128xf32>
    %7 = arith.mulf %5, %6 : vector<96x128xf32>
    %c0_6 = arith.constant 0 : index
    %c0_7 = arith.constant 0 : index
    %8 = vector.load %arg7[%c0_6, %c0_7] : memref<96x128xf32, #tpu.memory_space<vmem>>, vector<96x128xf32>
    tpu.vector_store %arg7[%c0_6, %c0_7], %7 {strides = array<i32>} : memref<96x128xf32, #tpu.memory_space<vmem>>, vector<96x128xf32>,
    %c0_8 = arith.constant 0 : index
    %c0_9 = arith.constant 0 : index
    %9 = vector.load %arg4[%c0_8, %c0_9] : memref<216x594xf32, #tpu.memory_space<vmem>>, vector<216x594xf32>
    %c0_10 = arith.constant 0 : index
    %c0_11 = arith.constant 0 : index
    %10 = vector.load %arg5[%c0_10, %c0_11] : memref<594x128xf32, #tpu.memory_space<vmem>>, vector<594x128xf32>
    %cst_12 = arith.constant dense<0.000000e+00> : vector<216x128xf32>
    %11 = tpu.matmul %9, %10, %cst_12 {dimension_numbers = #tpu.dot_dimension_numbers<[1], [0], [0], [1], [0, 0, 1, 1], [], []>} : vector<216x594xf32>, vector<594x128xf32>, vector<216x128xf32> -> vector<216x128xf32>
    %c0_13 = arith.constant 0 : index
    %c0_14 = arith.constant 0 : index
    %12 = vector.load %arg6[%c0_13, %c0_14] : memref<1x128xf32, #tpu.memory_space<vmem>>, vector<1x128xf32>
    %13 = vector.broadcast %12 : vector<1x128xf32> to vector<216x128xf32>
    %14 = arith.addf %11, %13 : vector<216x128xf32>
    %c0_15 = arith.constant 0 : index
    %c0_16 = arith.constant 0 : index
    %15 = vector.load %arg8[%c0_15, %c0_16] : memref<216x128xf32, #tpu.memory_space<vmem>>, vector<216x128xf32>
    tpu.vector_store %arg8[%c0_15, %c0_16], %14 {strides = array<i32>} : memref<216x128xf32, #tpu.memory_space<vmem>>, vector<216x128xf32>,
    return
  }
  func.func @transform_0(%arg0: i32) -> (i32, i32) {
    %c0_i32 = arith.constant 0 : i32
    %c0_i32_0 = arith.constant 0 : i32
    return %arg0, %c0_i32 : i32, i32
  }
  func.func @transform_1(%arg0: i32) -> (i32, i32) {
    %c0_i32 = arith.constant 0 : i32
    %c0_i32_0 = arith.constant 0 : i32
    %c0_i32_1 = arith.constant 0 : i32
    return %c0_i32, %c0_i32_0 : i32, i32
  }
  func.func @transform_2(%arg0: i32) -> (i32, i32) {
    %c0_i32 = arith.constant 0 : i32
    %c0_i32_0 = arith.constant 0 : i32
    %c0_i32_1 = arith.constant 0 : i32
    return %c0_i32, %c0_i32_0 : i32, i32
  }
  func.func @transform_3(%arg0: i32) -> (i32, i32) {
    %c0_i32 = arith.constant 0 : i32
    %c0_i32_0 = arith.constant 0 : i32
    return %arg0, %c0_i32 : i32, i32
  }
  func.func @transform_4(%arg0: i32) -> (i32, i32) {
    %c0_i32 = arith.constant 0 : i32
    %c0_i32_0 = arith.constant 0 : i32
    %c0_i32_1 = arith.constant 0 : i32
    return %c0_i32, %c0_i32_0 : i32, i32
  }
  func.func @transform_5(%arg0: i32) -> (i32, i32) {
    %c0_i32 = arith.constant 0 : i32
    %c0_i32_0 = arith.constant 0 : i32
    %c0_i32_1 = arith.constant 0 : i32
    return %c0_i32, %c0_i32_0 : i32, i32
  }
  func.func @transform_6(%arg0: i32) -> (i32, i32) {
    %c0_i32 = arith.constant 0 : i32
    %c0_i32_0 = arith.constant 0 : i32
    return %arg0, %c0_i32 : i32, i32
  }
  func.func @transform_7(%arg0: i32) -> (i32, i32) {
    %c0_i32 = arith.constant 0 : i32
    %c0_i32_0 = arith.constant 0 : i32
    return %arg0, %c0_i32 : i32, i32
  }
}

</mosaic_0001>

<bundles_post_ra>
// kernel: model_forward.1
= control target key start
LH: loop header
LB: loop body
LE: loop exit
PB: predicated region body
PF: predicated region fallthrough
CT: control target
= control target key end

     0   :  { %s2117_s24 = smov 0   ;;  %s2895_s0 = inlined_call_operand.vmem [shape: f32[192,11], index: 0, kind: input, shape index: {}]   ;;  %s2896_s1 = inlined_call_operand.vmem [shape: f32[11,128], index: 1, kind: input, shape index: {}]   ;;  %s2897_s2 = inlined_call_operand.vmem [shape: f32[1,128], index: 2, kind: input, shape index: {}]   ;;  %s2898_s3 = inlined_call_operand.vmem [shape: f32[432,594], index: 3, kind: input, shape index: {}]   ;;  %s2899_s4 = inlined_call_operand.vmem [shape: f32[594,128], index: 4, kind: input, shape index: {}]   ;;  %s2900_s5 = inlined_call_operand.vmem [shape: f32[1,128], index: 5, kind: input, shape index: {}]   ;;  %s2901_s6 = inlined_call_operand.vmem [shape: f32[192,128], index: 6, kind: output, shape index: {0}]   ;;  %s2902_s7 = inlined_call_operand.vmem [shape: f32[432,128], index: 7, kind: output, shape index: {1}]  }
   0x1 LB: > { %s1564_s25 = sadd.s32 4294967295, %s2071_s24   ;;  %p1568_p0 = scmp.ge.s32.totalorder %s2071_s24, 1  ;;  %s2071_s24 = sphi %s2117_s24, %s18_s24  }
   0x2   : > { %p253_p1 = scmp.lt.s32.totalorder %s2071_s24, 3 }
   0x4   : > { %p254_p2 = pnand %p1568_p0, %p253_p1 }
   0x5   : > { %v699_v0 = vld [vmem:[%s2899_s4 + $0x100] sm:$0xff] (!%p254_p2)  ;;  %v700_v1 = vld [vmem:[%s2899_s4 + $0x108] sm:$0xff] (!%p254_p2)  ;;  %vm379_vm0 = vcmask (!%p254_p2), 1042432   ;;  %v2073_v3 = vmov (!%p254_p2), 0.0|0.0   ;;  %vm2074_vm1 = vmmov (!%p254_p2), 1   ;;  %v701_v6 = vld [vmem:[%s2899_s4 + $0x110] sm:$0xff] (!%p254_p2) }
   0x6   : > { %257 = sbr.rel (%p254_p2) target bundleno = 455 (0x1c7), region = 44  ;;  %v333_v2 = vld [vmem:[%s2896_s1] sm:$0xff] (!%p254_p2)  ;;  %1912 = vmatprep.subr.bf16.mxu1 (!%p254_p2), %v2073_v3  ;;  %v2135_v4 = vpack.c.bf16 (!%p254_p2), %v700_v1, %v699_v0  ;;  %v334_v5 = vld [vmem:[%s2896_s1 + $0x8] sm:$0x7] (!%p254_p2)  ;;  %vm1796_vm2 = vmpackc.low (!%p254_p2), %vm379_vm0, %vm2074_vm1  ;;  %vm342_vm3 = vcmask (!%p254_p2), 89088   ;;  %vm831_vm4 = vcmask (!%p254_p2), 1041408  }
   0x7   : > { %s296_s13 = smul.u32 (!%p254_p2), 12, %s1564_s25  ;;  %v1795_v7 = vpack.c.bf16 (!%p254_p2), %v334_v5, %v333_v2  ;;  %v702_v8 = vld [vmem:[%s2899_s4 + $0x118] sm:$0xff] (!%p254_p2)  ;;  %v703_v10 = vld [vmem:[%s2899_s4 + $0x120] sm:$0xff] (!%p254_p2)  ;;  %v704_v11 = vld [vmem:[%s2899_s4 + $0x128] sm:$0xff] (!%p254_p2)  ;;  %vm2076_vm5 = vmmov (!%p254_p2), 0   ;;  %vm749_vm6 = vcmask (!%p254_p2), 670720  }
   0x8   : > { %1928 = vmatpush1.bf16.msra.mxu1 (!%p254_p2), %v2135_v4  ;;  %v2147_v9 = vpack.c.bf16 (!%p254_p2), %v702_v8, %v701_v6  ;;  %s2156_s20 = smul.u32 (!%p254_p2), 27, %s1564_s25  ;;  %v667_v12 = vld [vmem:[%s2899_s4] sm:$0xff] (!%p254_p2)  ;;  %v668_v13 = vld [vmem:[%s2899_s4 + $0x8] sm:$0xff] (!%p254_p2)  ;;  %v2169_v14 = vpack.c.bf16 (!%p254_p2), %v704_v11, %v703_v10  ;;  %v669_v16 = vld [vmem:[%s2899_s4 + $0x10] sm:$0xff] (!%p254_p2) }
   0x9   : > { %p297_p3 = scmp.lt.s32.totalorder (!%p254_p2), %s296_s13, 23  ;;  %1797 = vmatprep.subr.msk.bf16.mxu0 (!%p254_p2), %vm1796_vm2, %v1795_v7  ;;  %1913 = vmatprep.subr.bf16.mxu1 (!%p254_p2), %v2073_v3  ;;  %v1802_v15 = vpack.c.bf16 (!%p254_p2), %v668_v13, %v667_v12  ;;  %v705_v17 = vld [vmem:[%s2899_s4 + $0x130] sm:$0xff] (!%p254_p2)  ;;  %v706_v18 = vld [vmem:[%s2899_s4 + $0x138] sm:$0xff] (!%p254_p2)  ;;  %v707_v24 = vld [vmem:[%s2899_s4 + $0x140] sm:$0xff] (!%p254_p2) }
   0xa   : > { %1800 = vmatpush3.bf16.msk.msra.mxu0 (!%p254_p2), %vm1796_vm2, %v1795_v7  ;;  %v670_v21 = vld [vmem:[%s2899_s4 + $0x18] sm:$0xff] (!%p254_p2)  ;;  %p303_p4 = scmp.lt.s32.totalorder (!%p254_p2), %s2156_s20, 53  ;;  %v2197_v22 = vpack.c.bf16 (!%p254_p2), %v706_v18, %v705_v17  ;;  %v708_v25 = vld [vmem:[%s2899_s4 + $0x148] sm:$0xff] (!%p254_p2)  ;;  %v671_v26 = vld [vmem:[%s2899_s4 + $0x20] sm:$0xff] (!%p254_p2) }
   0xb   : > { %1801 = vmatprep.subr.bf16.mxu0 (!%p254_p2), %v2073_v3  ;;  %v1805_v23 = vpack.c.bf16 (!%p254_p2), %v670_v21, %v669_v16  ;;  %v672_v27 = vld [vmem:[%s2899_s4 + $0x28] sm:$0xff] (!%p254_p2)  ;;  %v2217_v28 = vpack.c.bf16 (!%p254_p2), %v708_v25, %v707_v24  ;;  %v709_v30 = vld [vmem:[%s2899_s4 + $0x150] sm:$0xff] (!%p254_p2)  ;;  %v710_v31 = vld [vmem:[%s2899_s4 + $0x158] sm:$0xff] (!%p254_p2) }
   0xc   : > { %1929 = vmatpush1.bf16.msra.mxu1 (!%p254_p2), %v2147_v9  ;;  %v1808_v29 = vpack.c.bf16 (!%p254_p2), %v672_v27, %v671_v26  ;;  %v673_v32 = vld [vmem:[%s2899_s4 + $0x30] sm:$0xff] (!%p254_p2)  ;;  %v674_v33 = vld [vmem:[%s2899_s4 + $0x38] sm:$0xff] (!%p254_p2)  ;;  %v2238_v36 = vpack.c.bf16 (!%p254_p2), %v710_v31, %v709_v30  ;;  %v711_v39 = vld [vmem:[%s2899_s4 + $0x160] sm:$0xff] (!%p254_p2) }
   0xd   : > { %s2904_s13 = smov (!%p297_p3, %s296_s13), 23  ;;  %1914 = vmatprep.subr.bf16.mxu1 %v2073_v3  ;;  %s2906_s20 = smov (!%p303_p4, %s2156_s20), 53  ;;  %v1811_v38 = vpack.c.bf16 %v674_v33, %v673_v32  ;;  %v712_v40 = vld [vmem:[%s2899_s4 + $0x168] sm:$0xff]  ;;  %v675_v42 = vld [vmem:[%s2899_s4 + $0x40] sm:$0xff]  ;;  %v713_v46 = vld [vmem:[%s2899_s4 + $0x170] sm:$0xff] }
   0xe   : > { %s1569_s25 = sshll.u32 %s2904_s13, 3  ;;  %s2052_s14 = smul.u32 40, %s2906_s20  ;;  %v676_v43 = vld [vmem:[%s2899_s4 + $0x48] sm:$0xff]  ;;  %v2265_v45 = vpack.c.bf16 %v712_v40, %v711_v39  ;;  %v714_v48 = vld [vmem:[%s2899_s4 + $0x178] sm:$0xff]  ;;  %v677_v51 = vld [vmem:[%s2899_s4 + $0x50] sm:$0xff] }
   0xf   : > { %s2176_s29 = scalar_lea.vmem %s2895_s0, %s1569_s25  ;;  %v1814_v47 = vpack.c.bf16 %v676_v43, %v675_v42  ;;  %v678_v52 = vld [vmem:[%s2899_s4 + $0x58] sm:$0xff]  ;;  %v2287_v54 = vpack.c.bf16 %v714_v48, %v713_v46  ;;  %v715_v56 = vld [vmem:[%s2899_s4 + $0x180] sm:$0xff]  ;;  %v716_v57 = vld [vmem:[%s2899_s4 + $0x188] sm:$0xff]  ;;  %s2740_s27 = scalar_lea.vmem %s2901_s6, %s1569_s25 }
  0x10   : > { %v321_v19 = vld [vmem:[%s2176_s29] sm:$0xff]  ;;  %v322_v20 = vld [vmem:[%s2176_s29 + $0x8] sm:$0xff]  ;;  %1930 = vmatpush1.bf16.msra.mxu1 %v2169_v14  ;;  %v323_v34 = vld [vmem:[%s2176_s29 + $0x10] sm:$0xff]  ;;  %s2261_s28 = scalar_lea.vmem %s2898_s3, %s2052_s14  ;;  %v1817_v55 = vpack.c.bf16 %v678_v52, %v677_v51  ;;  %v2308_v62 = vpack.c.bf16 %v716_v57, %v715_v56 }
  0x11   : > { %1674 = vmatprep.mubr.msk.f32.mxu0 %vm342_vm3, %v321_v19  ;;  %1915 = vmatprep.subr.bf16.mxu1 %v2073_v3  ;;  %v324_v35 = vld [vmem:[%s2176_s29 + $0x18] sm:$0xff]  ;;  %v325_v37 = vld [vmem:[%s2176_s29 + $0x20] sm:$0xff]  ;;  %v326_v41 = vld [vmem:[%s2176_s29 + $0x28] sm:$0xff] }
  0x12   : > { %1675 = vmatmul.mubr.msk.f32.vlgmr.msra.gmra.mrb[0].mxu0 %vm342_vm3, %v322_v20  ;;  %v327_v44 = vld [vmem:[%s2176_s29 + $0x30] sm:$0xff]  ;;  %v328_v49 = vld [vmem:[%s2176_s29 + $0x38] sm:$0xff]  ;;  %v600_v50 = vld [vmem:[%s2261_s28 + $0x220] sm:$0xff] }
  0x13   : > { %1803 = vmatpush1.bf16.msra.mxu0 %v1802_v15  ;;  %1677 = vmatprep.mubr.msk.f32.mxu0 %vm342_vm3, %v323_v34  ;;  %v329_v53 = vld [vmem:[%s2176_s29 + $0x40] sm:$0xff]  ;;  %v330_v58 = vld [vmem:[%s2176_s29 + $0x48] sm:$0xff]  ;;  %v331_v61 = vld [vmem:[%s2176_s29 + $0x50] sm:$0xff] }
  0x14   : > { %1804 = vmatprep.subr.bf16.mxu0 %v2073_v3  ;;  %1931 = vmatpush1.bf16.msra.mxu1 %v2197_v22  ;;  %v679_v59 = vld [vmem:[%s2899_s4 + $0x60] sm:$0xff]  ;;  %v680_v60 = vld [vmem:[%s2899_s4 + $0x68] sm:$0xff]  ;;  %v717_v0 = vld [vmem:[%s2899_s4 + $0x190] sm:$0xff] }
  0x15   : > { %1916 = vmatprep.subr.bf16.mxu1 %v2073_v3  ;;  %1164 = vmatprep.mubr.f32.mxu1 %v600_v50  ;;  %v1820_v63 = vpack.c.bf16 %v680_v60, %v679_v59  ;;  %v718_v1 = vld [vmem:[%s2899_s4 + $0x198] sm:$0xff]  ;;  %v681_v5 = vld [vmem:[%s2899_s4 + $0x70] sm:$0xff]  ;;  %v533_v7 = vld [vmem:[%s2261_s28 + $0x8] sm:$0xff] }
  0x16   : > { %1678 = vmatmul.mubr.msk.f32.gmra.mrb[2].mxu0 %vm342_vm3, %v324_v35  ;;  %v332_v2 = vld [vmem:[%s2176_s29 + $0x58] sm:$0xff]  ;;  %v2329_v8 = vpack.c.bf16 %v718_v1, %v717_v0  ;;  %v719_v11 = vld [vmem:[%s2899_s4 + $0x1a0] sm:$0xff]  ;;  %v720_v12 = vld [vmem:[%s2899_s4 + $0x1a8] sm:$0xff] }
  0x17   : > { %1806 = vmatpush1.bf16.msra.mxu0 %v1805_v23  ;;  %1680 = vmatprep.mubr.msk.f32.mxu0 %vm342_vm3, %v325_v37  ;;  %v682_v6 = vld [vmem:[%s2899_s4 + $0x78] sm:$0xff]  ;;  %v683_v13 = vld [vmem:[%s2899_s4 + $0x80] sm:$0xff]  ;;  %v684_v15 = vld [vmem:[%s2899_s4 + $0x88] sm:$0xff]  ;;  %v2347_v16 = vpack.c.bf16 %v720_v12, %v719_v11 }
  0x18   : > { %1807 = vmatprep.subr.bf16.mxu0 %v2073_v3  ;;  %1932 = vmatpush1.bf16.msra.mxu1 %v2217_v28  ;;  %v1823_v10 = vpack.c.bf16 %v682_v6, %v681_v5  ;;  %v1826_v17 = vpack.c.bf16 %v684_v15, %v683_v13  ;;  %v721_v18 = vld [vmem:[%s2899_s4 + $0x1b0] sm:$0xff]  ;;  %v722_v19 = vld [vmem:[%s2899_s4 + $0x1b8] sm:$0xff]  ;;  %v723_v25 = vld [vmem:[%s2899_s4 + $0x1c0] sm:$0xff] }
  0x19   : > { %1917 = vmatprep.subr.bf16.mxu1 %v2073_v3  ;;  %v685_v20 = vld [vmem:[%s2899_s4 + $0x90] sm:$0xff]  ;;  %v686_v21 = vld [vmem:[%s2899_s4 + $0x98] sm:$0xff]  ;;  %v2364_v23 = vpack.c.bf16 %v722_v19, %v721_v18  ;;  %v724_v26 = vld [vmem:[%s2899_s4 + $0x1c8] sm:$0xff] }
  0x1a   : > { %1681 = vmatmul.mubr.msk.f32.gmra.mrb[4].mxu0 %vm342_vm3, %v326_v41  ;;  %v1829_v24 = vpack.c.bf16 %v686_v21, %v685_v20  ;;  %v687_v27 = vld [vmem:[%s2899_s4 + $0xa0] sm:$0xff]  ;;  %v2381_v30 = vpack.c.bf16 %v724_v26, %v723_v25  ;;  %v725_v32 = vld [vmem:[%s2899_s4 + $0x1d0] sm:$0xff]  ;;  %v726_v33 = vld [vmem:[%s2899_s4 + $0x1d8] sm:$0xff] }
  0x1b   : > { %1809 = vmatpush1.bf16.msra.mxu0 %v1808_v29  ;;  %1683 = vmatprep.mubr.msk.f32.mxu0 %vm342_vm3, %v327_v44  ;;  %v688_v29 = vld [vmem:[%s2899_s4 + $0xa8] sm:$0xff]  ;;  %v689_v34 = vld [vmem:[%s2899_s4 + $0xb0] sm:$0xff]  ;;  %v690_v35 = vld [vmem:[%s2899_s4 + $0xb8] sm:$0xff]  ;;  %v2398_v37 = vpack.c.bf16 %v726_v33, %v725_v32 }
  0x1c   : > { %1810 = vmatprep.subr.bf16.mxu0 %v2073_v3  ;;  %1933 = vmatpush1.bf16.msra.mxu1 %v2238_v36  ;;  %v1832_v31 = vpack.c.bf16 %v688_v29, %v687_v27  ;;  %v727_v39 = vld [vmem:[%s2899_s4 + $0x1e0] sm:$0xff]  ;;  %v728_v40 = vld [vmem:[%s2899_s4 + $0x1e8] sm:$0xff]  ;;  %v729_v46 = vld [vmem:[%s2899_s4 + $0x1f0] sm:$0xff] }
  0x1d   : > { %1918 = vmatprep.subr.bf16.mxu1 %v2073_v3  ;;  %v691_v41 = vld [vmem:[%s2899_s4 + $0xc0] sm:$0xff]  ;;  %v692_v42 = vld [vmem:[%s2899_s4 + $0xc8] sm:$0xff]  ;;  %v2415_v43 = vpack.c.bf16 %v728_v40, %v727_v39  ;;  %v693_v48 = vld [vmem:[%s2899_s4 + $0xd0] sm:$0xff] }
  0x1e   : > { %1684 = vmatmul.mubr.msk.f32.gmra.mrb[6].mxu0 %vm342_vm3, %v328_v49  ;;  %v1838_v44 = vpack.c.bf16 %v692_v42, %v691_v41  ;;  %v694_v49 = vld [vmem:[%s2899_s4 + $0xd8] sm:$0xff]  ;;  %v731_v52 = vld [vmem:[%s2899_s4 + $0x200] sm:$0xff]  ;;  %v696_v56 = vld [vmem:[%s2899_s4 + $0xe8] sm:$0xff]  ;;  %v2075_v41 = vmov 0.0  }
  0x1f   : > { %1812 = vmatpush1.bf16.msra.mxu0 %v1811_v38  ;;  %1686 = vmatprep.mubr.msk.f32.mxu0 %vm342_vm3, %v329_v53  ;;  %v1835_v38 = vpack.c.bf16 %v690_v35, %v689_v34  ;;  %v1841_v51 = vpack.c.bf16 %v694_v49, %v693_v48  ;;  %v732_v53 = vld [vmem:[%s2899_s4 + $0x208] sm:$0xff]  ;;  %v599_v57 = vld [vmem:[%s2261_s28 + $0x218] sm:$0xff]  ;;  %v697_v0 = vld [vmem:[%s2899_s4 + $0xf0] sm:$0xff] }
  0x20   : > { %1813 = vmatprep.subr.bf16.mxu0 %v2073_v3  ;;  %1934 = vmatpush1.bf16.msra.mxu1 %v2265_v45  ;;  %v605_v60 = vld [vmem:[%s2261_s28 + $0x248] sm:$0xff]  ;;  %v698_v1 = vld [vmem:[%s2899_s4 + $0xf8] sm:$0xff]  ;;  %v532_v13 = vld [vmem:[%s2261_s28] sm:$0xff] }
  0x21   : > { %1919 = vmatprep.subr.bf16.mxu1 %v2073_v3  ;;  %v1847_v6 = vpack.c.bf16 %v698_v1, %v697_v0  ;;  %v736_v11 = vld [vmem:[%s2899_s4 + $0x228] sm:$0xff]  ;;  %v615_v15 = vld [vmem:[%s2261_s28 + $0x298] sm:$0xff]  ;;  %v737_v19 = vld [vmem:[%s2899_s4 + $0x230] sm:$0xff] }
  0x22   : > { %1687 = vmatmul.mubr.msk.f32.gmra.mrb[8].mxu0 %vm342_vm3, %v330_v58  ;;  %v1898_v58 = vpack.c.bf16 %v732_v53, %v731_v52  ;;  %v609_v12 = vld [vmem:[%s2261_s28 + $0x268] sm:$0xff]  ;;  %v738_v20 = vld [vmem:[%s2899_s4 + $0x238] sm:$0xff]  ;;  %v614_v21 = vld [vmem:[%s2261_s28 + $0x290] sm:$0xff] }
  0x23   : > { %1815 = vmatpush1.bf16.msra.mxu0 %v1814_v47  ;;  %1689 = vmatprep.mubr.msk.f32.mxu0 %vm342_vm3, %v331_v61  ;;  %v730_v47 = vld [vmem:[%s2899_s4 + $0x1f8] sm:$0xff]  ;;  %v733_v61 = vld [vmem:[%s2899_s4 + $0x210] sm:$0xff]  ;;  %v620_v25 = vld [vmem:[%s2261_s28 + $0x2c0] sm:$0xff]  ;;  %v1907_v27 = vpack.c.bf16 %v738_v20, %v737_v19 }
  0x24   : > { %1816 = vmatprep.subr.bf16.mxu0 %v2073_v3  ;;  %1935 = vmatpush1.bf16.msra.mxu1 %v2287_v54  ;;  %v2432_v50 = vpack.c.bf16 %v730_v47, %v729_v46  ;;  %v543_v26 = vld [vmem:[%s2261_s28 + $0x58] sm:$0xff]  ;;  %v739_v29 = vld [vmem:[%s2899_s4 + $0x240] sm:$0xff]  ;;  %v542_v32 = vld [vmem:[%s2261_s28 + $0x50] sm:$0xff] }
  0x25   : > { %1920 = vmatprep.subr.bf16.mxu1 %v2073_v3  ;;  %v625_v33 = vld [vmem:[%s2261_s28 + $0x2e8] sm:$0xff]  ;;  %v548_v34 = vld [vmem:[%s2261_s28 + $0x80] sm:$0xff]  ;;  %v547_v39 = vld [vmem:[%s2261_s28 + $0x78] sm:$0xff] }
  0x26   : > { %1690 = vmatmul.mubr.msk.f32.gmra.mrb[10].mxu0 %vm342_vm3, %v332_v2  ;;  %v604_v2 = vld [vmem:[%s2261_s28 + $0x240] sm:$0xff]  ;;  %v553_v40 = vld [vmem:[%s2261_s28 + $0xa8] sm:$0xff]  ;;  %v741_v42 = vld [vmem:[%s2899_s4 + $0x250] sm:$0x3] }
  0x27   : > { %1818 = vmatpush1.bf16.msra.mxu0 %v1817_v55  ;;  %899 = vmatprep.mubr.f32.mxu0 %v533_v7  ;;  %v695_v55 = vld [vmem:[%s2899_s4 + $0xe0] sm:$0xff]  ;;  %v610_v7 = vld [vmem:[%s2261_s28 + $0x270] sm:$0xff]  ;;  %v635_v46 = vld [vmem:[%s2261_s28 + $0x338] sm:$0xff] }
  0x28   : > { %1819 = vmatprep.subr.bf16.mxu0 %v2073_v3  ;;  %1936 = vmatpush1.bf16.msra.mxu1 %v2308_v62  ;;  %v1844_v59 = vpack.c.bf16 %v696_v56, %v695_v55  ;;  %v558_v47 = vld [vmem:[%s2261_s28 + $0xd0] sm:$0xff]  ;;  %v557_v49 = vld [vmem:[%s2261_s28 + $0xc8] sm:$0xff]  ;;  %v563_v52 = vld [vmem:[%s2261_s28 + $0xf8] sm:$0xff] }
  0x29   : > { %1921 = vmatprep.subr.bf16.mxu1 %v2073_v3  ;;  %v634_v48 = vld [vmem:[%s2261_s28 + $0x330] sm:$0xff]  ;;  %v645_v55 = vld [vmem:[%s2261_s28 + $0x388] sm:$0xff]  ;;  %v568_v56 = vld [vmem:[%s2261_s28 + $0x120] sm:$0xff] }
  0x2a   : > { %v562_v53 = vld [vmem:[%s2261_s28 + $0xf0] sm:$0xff]  ;;  %v577_v0 = vld [vmem:[%s2261_s28 + $0x168] sm:$0xff]  ;;  %v660_v1 = vld [vmem:[%s2261_s28 + $0x400] sm:$0xff] }
  0x2b   : > { %1821 = vmatpush1.bf16.msra.mxu0 %v1820_v63  ;;  %v734_v63 = vld [vmem:[%s2899_s4 + $0x218] sm:$0xff]  ;;  %v608_v19 = vld [vmem:[%s2261_s28 + $0x260] sm:$0xff] }
  0x2c   : > { %1822 = vmatprep.subr.bf16.mxu0 %v2073_v3  ;;  %1937 = vmatpush1.bf16.msra.mxu1 %v2329_v8  ;;  %v1901_v5 = vpack.c.bf16 %v734_v63, %v733_v61  ;;  %v655_v61 = vld [vmem:[%s2261_s28 + $0x3d8] sm:$0xff]  ;;  %v578_v63 = vld [vmem:[%s2261_s28 + $0x170] sm:$0xff] }
  0x2d   : > { %1922 = vmatprep.subr.bf16.mxu1 %v2073_v3  ;;  %v607_v20 = vld [vmem:[%s2261_s28 + $0x258] sm:$0xff] }
  0x2f   : > { %1824 = vmatpush1.bf16.msra.mxu0 %v1823_v10  ;;  %v735_v10 = vld [vmem:[%s2899_s4 + $0x220] sm:$0xff] }
  0x30   : > { %1825 = vmatprep.subr.bf16.mxu0 %v2073_v3  ;;  %1938 = vmatpush1.bf16.msra.mxu1 %v2347_v16  ;;  %v1904_v18 = vpack.c.bf16 %v736_v11, %v735_v10  ;;  %v587_v10 = vld [vmem:[%s2261_s28 + $0x1b8] sm:$0xff]  ;;  %v593_v11 = vld [vmem:[%s2261_s28 + $0x1e8] sm:$0xff] }
  0x31   : > { %1923 = vmatprep.subr.bf16.mxu1 %v2073_v3 }
  0x33   : > { %1827 = vmatpush1.bf16.msra.mxu0 %v1826_v17  ;;  %v538_v17 = vld [vmem:[%s2261_s28 + $0x30] sm:$0xff] }
  0x34   : > { %1828 = vmatprep.subr.bf16.mxu0 %v2073_v3  ;;  %1939 = vmatpush1.bf16.msra.mxu1 %v2364_v23 }
  0x35   : > { %1924 = vmatprep.subr.bf16.mxu1 %v2073_v3 }
  0x37   : > { %1830 = vmatpush1.bf16.msra.mxu0 %v1829_v24  ;;  %v537_v24 = vld [vmem:[%s2261_s28 + $0x28] sm:$0xff] }
  0x38   : > { %1831 = vmatprep.subr.bf16.mxu0 %v2073_v3  ;;  %1940 = vmatpush1.bf16.msra.mxu1 %v2381_v30 }
  0x39   : > { %1925 = vmatprep.subr.bf16.mxu1 %v2073_v3 }
  0x3b   : > { %1833 = vmatpush1.bf16.msra.mxu0 %v1832_v31  ;;  %v619_v31 = vld [vmem:[%s2261_s28 + $0x2b8] sm:$0xff] }
  0x3c   : > { %1834 = vmatprep.subr.bf16.mxu0 %v2073_v3  ;;  %1941 = vmatpush1.bf16.msra.mxu1 %v2398_v37 }
  0x3d   : > { %1926 = vmatprep.subr.bf16.mxu1 %v2073_v3 }
  0x3f   : > { %1836 = vmatpush1.bf16.msra.mxu0 %v1835_v38  ;;  %v624_v38 = vld [vmem:[%s2261_s28 + $0x2e0] sm:$0xff] }
  0x40   : > { %1837 = vmatprep.subr.bf16.mxu0 %v2073_v3  ;;  %1942 = vmatpush1.bf16.msra.mxu1 %v2415_v43 }
  0x41   : > { %1927 = vmatprep.subr.bf16.mxu1 %v2073_v3 }
  0x43   : > { %1839 = vmatpush1.bf16.msra.mxu0 %v1838_v44  ;;  %v552_v44 = vld [vmem:[%s2261_s28 + $0xa0] sm:$0xff] }
  0x44   : > { %1840 = vmatprep.subr.bf16.mxu0 %v2073_v3  ;;  %1943 = vmatpush1.bf16.msra.mxu1 %v2432_v50 }
  0x45   : > { %1897 = vmatprep.subr.bf16.mxu1 %v2073_v3 }
  0x47   : > { %1842 = vmatpush1.bf16.msra.mxu0 %v1841_v51  ;;  %1165 = vmatmul.mubr.f32.vlgmr.msra.gmra.mrb[0].mxu1 %v599_v57  ;;  %v640_v51 = vld [vmem:[%s2261_s28 + $0x360] sm:$0xff]  ;;  %v567_v57 = vld [vmem:[%s2261_s28 + $0x118] sm:$0xff] }
  0x48   : > { %1843 = vmatprep.subr.bf16.mxu0 %v2073_v3  ;;  %1169 = vmatprep.mubr.f32.mxu1 %v605_v60  ;;  %v572_v60 = vld [vmem:[%s2261_s28 + $0x140] sm:$0xff] }
  0x49   : > { %1899 = vmatpush3.bf16.msra.mxu1 %v1898_v58  ;;  %v650_v58 = vld [vmem:[%s2261_s28 + $0x3b0] sm:$0xff] }
  0x4a   : > { %1900 = vmatprep.subr.bf16.mxu1 %v2073_v3 }
  0x4b   : > { %1845 = vmatpush1.bf16.msra.mxu0 %v1844_v59  ;;  %1170 = vmatmul.mubr.f32.gmra.mrb[2].mxu1 %v604_v2  ;;  %v573_v59 = vld [vmem:[%s2261_s28 + $0x148] sm:$0xff]  ;;  %v583_v2 = vld [vmem:[%s2261_s28 + $0x198] sm:$0xff] }
  0x4c   : > { %1846 = vmatprep.subr.bf16.mxu0 %v2073_v3  ;;  %1174 = vmatprep.mubr.f32.mxu1 %v610_v7  ;;  %v588_v7 = vld [vmem:[%s2261_s28 + $0x1c0] sm:$0xff] }
  0x4d   : > { %1902 = vmatpush3.bf16.msra.mxu1 %v1901_v5  ;;  %v582_v5 = vld [vmem:[%s2261_s28 + $0x190] sm:$0xff] }
  0x4e   : > { %1903 = vmatprep.subr.bf16.mxu1 %v2073_v3 }
  0x4f   : > { %1848 = vmatpush1.bf16.msra.mxu0 %v1847_v6  ;;  %1175 = vmatmul.mubr.f32.gmra.mrb[4].mxu1 %v609_v12  ;;  %v665_v6 = vld [vmem:[%s2261_s28 + $0x428] sm:$0xff]  ;;  %v592_v12 = vld [vmem:[%s2261_s28 + $0x1e0] sm:$0xff] }
  0x50   : > { %1849 = vmatprep.subr.bf16.mxu0 %v2073_v3  ;;  %1179 = vmatprep.mubr.f32.mxu1 %v615_v15  ;;  %v597_v15 = vld [vmem:[%s2261_s28 + $0x208] sm:$0xff] }
  0x51   : > { %1905 = vmatpush3.bf16.msra.mxu1 %v1904_v18  ;;  %v602_v18 = vld [vmem:[%s2261_s28 + $0x230] sm:$0xff] }
  0x52   : > { %900 = vmatmul.mubr.f32.vlgmr.msra.gmra.mrb[12].mxu0 %v532_v13  ;;  %1906 = vmatprep.subr.bf16.mxu1 %v2073_v3  ;;  %v541_v13 = vld [vmem:[%s2261_s28 + $0x48] sm:$0xff] }
  0x53   : > { %1851 = vmatpush1.bf16.msra.mxu0 %v2135_v4  ;;  %904 = vmatprep.mubr.f32.mxu0 %v538_v17  ;;  %v740_v4 = vld [vmem:[%s2899_s4 + $0x248] sm:$0xff]  ;;  %v603_v17 = vld [vmem:[%s2261_s28 + $0x238] sm:$0xff] }
  0x54   : > { %1852 = vmatprep.subr.bf16.mxu0 %v2073_v3  ;;  %1180 = vmatmul.mubr.f32.gmra.mrb[6].mxu1 %v614_v21  ;;  %v1910_v35 = vpack.c.bf16 %v740_v4, %v739_v29  ;;  %v613_v21 = vld [vmem:[%s2261_s28 + $0x288] sm:$0xff]  ;;  %v628_v29 = vld [vmem:[%s2261_s28 + $0x300] sm:$0xff]  ;;  %v571_v4 = vld [vmem:[%s2261_s28 + $0x138] sm:$0xff] }
  0x55   : > { %1184 = vmatprep.mubr.f32.mxu1 %v620_v25  ;;  %1908 = vmatpush3.bf16.msra.mxu1 %v1907_v27  ;;  %v617_v25 = vld [vmem:[%s2261_s28 + $0x2a8] sm:$0xff]  ;;  %v622_v27 = vld [vmem:[%s2261_s28 + $0x2d0] sm:$0xff] }
  0x56   : > { %905 = vmatmul.mubr.f32.gmra.mrb[14].mxu0 %v537_v24  ;;  %1909 = vmatprep.subr.bf16.mxu1 %v2073_v3  ;;  %v612_v24 = vld [vmem:[%s2261_s28 + $0x280] sm:$0xff] }
  0x57   : > { %909 = vmatprep.mubr.f32.mxu0 %v543_v26  ;;  %1854 = vmatpush1.bf16.msra.mxu0 %v2147_v9  ;;  %v630_v9 = vld [vmem:[%s2261_s28 + $0x310] sm:$0xff]  ;;  %v623_v26 = vld [vmem:[%s2261_s28 + $0x2d8] sm:$0xff] }
  0x58   : > { %1855 = vmatprep.subr.bf16.mxu0 %v2073_v3  ;;  %1185 = vmatmul.mubr.f32.gmra.mrb[8].mxu1 %v619_v31  ;;  %v627_v31 = vld [vmem:[%s2261_s28 + $0x2f8] sm:$0xff] }
  0x59   : > { %1189 = vmatprep.mubr.f32.mxu1 %v625_v33  ;;  %1911 = vmatpush3.bf16.msra.mxu1 %v1910_v35  ;;  %v576_v33 = vld [vmem:[%s2261_s28 + $0x160] sm:$0xff]  ;;  %v638_v35 = vld [vmem:[%s2261_s28 + $0x350] sm:$0xff] }
  0x5a   : > { %910 = vmatmul.mubr.f32.gmra.mrb[16].mxu0 %v542_v32  ;;  %1712 = vmatprep.subr.mxu1 %v2075_v41  ;;  %v633_v32 = vld [vmem:[%s2261_s28 + $0x328] sm:$0xff] }
  0x5b   : > { %914 = vmatprep.mubr.f32.mxu0 %v548_v34  ;;  %1857 = vmatpush1.bf16.msra.mxu0 %v2169_v14  ;;  %v629_v14 = vld [vmem:[%s2261_s28 + $0x308] sm:$0xff]  ;;  %v632_v34 = vld [vmem:[%s2261_s28 + $0x320] sm:$0xff] }
  0x5c   : > { %1858 = vmatprep.subr.bf16.mxu0 %v2073_v3  ;;  %1190 = vmatmul.mubr.f32.gmra.mrb[10].mxu1 %v624_v38  ;;  %v581_v38 = vld [vmem:[%s2261_s28 + $0x188] sm:$0xff] }
  0x5d   : > { %1194 = vmatprep.mubr.f32.mxu1 %v630_v9  ;;  %1713 = vmatpush3.msk.msra.mxu1 %vm831_vm4, %v741_v42  ;;  %v643_v9 = vld [vmem:[%s2261_s28 + $0x378] sm:$0xff]  ;;  %v642_v42 = vld [vmem:[%s2261_s28 + $0x370] sm:$0xff] }
  0x5e   : > { %915 = vmatmul.mubr.f32.gmra.mrb[18].mxu0 %v547_v39  ;;  %v637_v39 = vld [vmem:[%s2261_s28 + $0x348] sm:$0xff] }
  0x5f   : > { %919 = vmatprep.mubr.f32.mxu0 %v553_v40  ;;  %1860 = vmatpush1.bf16.msra.mxu0 %v2197_v22  ;;  %v639_v22 = vld [vmem:[%s2261_s28 + $0x358] sm:$0xff]  ;;  %v586_v40 = vld [vmem:[%s2261_s28 + $0x1b0] sm:$0xff] }
  0x60   : > { %1861 = vmatprep.subr.bf16.mxu0 %v2073_v3  ;;  %1195 = vmatmul.mubr.f32.gmra.mrb[12].mxu1 %v629_v14  ;;  %v648_v14 = vld [vmem:[%s2261_s28 + $0x3a0] sm:$0xff] }
  0x61   : > { %1199 = vmatprep.mubr.f32.mxu1 %v635_v46  ;;  %v647_v46 = vld [vmem:[%s2261_s28 + $0x398] sm:$0xff] }
  0x62   : > { %920 = vmatmul.mubr.f32.gmra.mrb[20].mxu0 %v552_v44  ;;  %v591_v44 = vld [vmem:[%s2261_s28 + $0x1d8] sm:$0xff] }
  0x63   : > { %924 = vmatprep.mubr.f32.mxu0 %v558_v47  ;;  %1863 = vmatpush1.bf16.msra.mxu0 %v2217_v28  ;;  %v644_v28 = vld [vmem:[%s2261_s28 + $0x380] sm:$0xff]  ;;  %v653_v47 = vld [vmem:[%s2261_s28 + $0x3c8] sm:$0xff] }
  0x64   : > { %1864 = vmatprep.subr.bf16.mxu0 %v2073_v3  ;;  %1200 = vmatmul.mubr.f32.gmra.mrb[14].mxu1 %v634_v48  ;;  %v596_v48 = vld [vmem:[%s2261_s28 + $0x200] sm:$0xff] }
  0x65   : > { %1204 = vmatprep.mubr.f32.mxu1 %v640_v51  ;;  %v658_v51 = vld [vmem:[%s2261_s28 + $0x3f0] sm:$0xff] }
  0x66   : > { %925 = vmatmul.mubr.f32.gmra.mrb[22].mxu0 %v557_v49  ;;  %v652_v49 = vld [vmem:[%s2261_s28 + $0x3c0] sm:$0xff] }
  0x67   : > { %929 = vmatprep.mubr.f32.mxu0 %v563_v52  ;;  %1866 = vmatpush1.bf16.msra.mxu0 %v2238_v36  ;;  %v649_v36 = vld [vmem:[%s2261_s28 + $0x3a8] sm:$0xff] }
  0x68   : > { %1867 = vmatprep.subr.bf16.mxu0 %v2073_v3  ;;  %1205 = vmatmul.mubr.f32.gmra.mrb[16].mxu1 %v639_v22  ;;  %v601_v52 = vld [vmem:[%s2261_s28 + $0x228] sm:$0xff] }
  0x69   : > { %1209 = vmatprep.mubr.f32.mxu1 %v645_v55  ;;  %v657_v22 = vld [vmem:[%s2261_s28 + $0x3e8] sm:$0xff]  ;;  %v606_v55 = vld [vmem:[%s2261_s28 + $0x250] sm:$0xff] }
  0x6a   : > { %930 = vmatmul.mubr.f32.gmra.mrb[24].mxu0 %v562_v53  ;;  %v663_v53 = vld [vmem:[%s2261_s28 + $0x418] sm:$0xff] }
  0x6b   : > { %934 = vmatprep.mubr.f32.mxu0 %v568_v56  ;;  %1869 = vmatpush1.bf16.msra.mxu0 %v2265_v45  ;;  %v654_v45 = vld [vmem:[%s2261_s28 + $0x3d0] sm:$0xff] }
  0x6c   : > { %1870 = vmatprep.subr.bf16.mxu0 %v2073_v3  ;;  %1210 = vmatmul.mubr.f32.gmra.mrb[18].mxu1 %v644_v28  ;;  %v662_v56 = vld [vmem:[%s2261_s28 + $0x410] sm:$0xff]  ;;  %v535_v28 = vld [vmem:[%s2261_s28 + $0x18] sm:$0xff] }
  0x6d   : > { %1214 = vmatprep.mubr.f32.mxu1 %v650_v58  ;;  %v534_v58 = vld [vmem:[%s2261_s28 + $0x10] sm:$0xff] }
  0x6e   : > { %935 = vmatmul.mubr.f32.gmra.mrb[26].mxu0 %v567_v57  ;;  %v611_v57 = vld [vmem:[%s2261_s28 + $0x278] sm:$0xff] }
  0x6f   : > { %939 = vmatprep.mubr.f32.mxu0 %v573_v59  ;;  %1872 = vmatpush1.bf16.msra.mxu0 %v2287_v54  ;;  %v659_v54 = vld [vmem:[%s2261_s28 + $0x3f8] sm:$0xff]  ;;  %v540_v59 = vld [vmem:[%s2261_s28 + $0x40] sm:$0xff] }
  0x70   : > { %1873 = vmatprep.subr.bf16.mxu0 %v2073_v3  ;;  %1215 = vmatmul.mubr.f32.gmra.mrb[20].mxu1 %v649_v36  ;;  %v616_v36 = vld [vmem:[%s2261_s28 + $0x2a0] sm:$0xff] }
  0x71   : > { %1219 = vmatprep.mubr.f32.mxu1 %v655_v61  ;;  %v545_v61 = vld [vmem:[%s2261_s28 + $0x68] sm:$0xff] }
  0x72   : > { %940 = vmatmul.mubr.f32.gmra.mrb[28].mxu0 %v572_v60  ;;  %v539_v60 = vld [vmem:[%s2261_s28 + $0x38] sm:$0xff] }
  0x73   : > { %944 = vmatprep.mubr.f32.mxu0 %v578_v63  ;;  %1875 = vmatpush1.bf16.msra.mxu0 %v2308_v62  ;;  %v664_v62 = vld [vmem:[%s2261_s28 + $0x420] sm:$0xff]  ;;  %v621_v63 = vld [vmem:[%s2261_s28 + $0x2c8] sm:$0xff] }
  0x74   : > { %1876 = vmatprep.subr.bf16.mxu0 %v2073_v3  ;;  %1220 = vmatmul.mubr.f32.gmra.mrb[22].mxu1 %v654_v45  ;;  %v544_v45 = vld [vmem:[%s2261_s28 + $0x60] sm:$0xff] }
  0x75   : > { %1224 = vmatprep.mubr.f32.mxu1 %v660_v1  ;;  %v626_v1 = vld [vmem:[%s2261_s28 + $0x2f0] sm:$0xff] }
  0x76   : > { %945 = vmatmul.mubr.f32.gmra.mrb[30].mxu0 %v577_v0  ;;  %v550_v0 = vld [vmem:[%s2261_s28 + $0x90] sm:$0xff] }
  0x77   : > { %949 = vmatprep.mubr.f32.mxu0 %v583_v2  ;;  %1878 = vmatpush1.bf16.msra.mxu0 %v2329_v8  ;;  %v536_v8 = vld [vmem:[%s2261_s28 + $0x20] sm:$0xff]  ;;  %v549_v2 = vld [vmem:[%s2261_s28 + $0x88] sm:$0xff] }
  0x78   : > { %1879 = vmatprep.subr.bf16.mxu0 %v2073_v3  ;;  %1225 = vmatmul.mubr.f32.gmra.mrb[24].mxu1 %v659_v54  ;;  %v555_v54 = vld [vmem:[%s2261_s28 + $0xb8] sm:$0xff] }
  0x79   : > { %1229 = vmatprep.mubr.f32.mxu1 %v665_v6  ;;  %v554_v6 = vld [vmem:[%s2261_s28 + $0xb0] sm:$0xff] }
  0x7a   : > { %950 = vmatmul.mubr.f32.gmra.mrb[32].mxu0 %v582_v5  ;;  %v631_v5 = vld [vmem:[%s2261_s28 + $0x318] sm:$0xff] }
  0x7b   : > { %954 = vmatprep.mubr.f32.mxu0 %v588_v7  ;;  %1881 = vmatpush1.bf16.msra.mxu0 %v2347_v16  ;;  %v598_v16 = vld [vmem:[%s2261_s28 + $0x210] sm:$0xff]  ;;  %v560_v7 = vld [vmem:[%s2261_s28 + $0xe0] sm:$0xff] }
  0x7c   : > { %1882 = vmatprep.subr.bf16.mxu0 %v2073_v3  ;;  %1230 = vmatmul.mubr.f32.gmra.mrb[26].mxu1 %v664_v62  ;;  %v636_v62 = vld [vmem:[%s2261_s28 + $0x340] sm:$0xff] }
  0x7d   : > { %1714 = vmatprep.mubr.msk.f32.mxu1 %vm2076_vm5, %v2075_v41 }
  0x7e   : > { %955 = vmatmul.mubr.f32.gmra.mrb[34].mxu0 %v587_v10  ;;  %v559_v10 = vld [vmem:[%s2261_s28 + $0xd8] sm:$0xff] }
  0x7f   : > { %959 = vmatprep.mubr.f32.mxu0 %v593_v11  ;;  %1884 = vmatpush1.bf16.msra.mxu0 %v2364_v23  ;;  %v546_v23 = vld [vmem:[%s2261_s28 + $0x70] sm:$0xff]  ;;  %v565_v11 = vld [vmem:[%s2261_s28 + $0x108] sm:$0xff] }
  0x80   : > { %1885 = vmatprep.subr.bf16.mxu0 %v2073_v3  ;;  %1715 = vmatmul.mubr.msk.f32.vlgmr.msra.gmra.mrb[28].mxu1 %vm749_vm6, %v536_v8  ;;  %v641_v8 = vld [vmem:[%s2261_s28 + $0x368] sm:$0xff] }
  0x81   : > { %1717 = vmatprep.mubr.msk.f32.mxu1 %vm2076_vm5, %v2075_v41 }
  0x82   : > { %960 = vmatmul.mubr.f32.gmra.mrb[36].mxu0 %v592_v12  ;;  %v564_v12 = vld [vmem:[%s2261_s28 + $0x100] sm:$0xff] }
  0x83   : > { %964 = vmatprep.mubr.f32.mxu0 %v598_v16  ;;  %1887 = vmatpush1.bf16.msra.mxu0 %v2381_v30  ;;  %v551_v30 = vld [vmem:[%s2261_s28 + $0x98] sm:$0xff]  ;;  %v570_v16 = vld [vmem:[%s2261_s28 + $0x130] sm:$0xff] }
  0x84   : > { %1888 = vmatprep.subr.bf16.mxu0 %v2073_v3  ;;  %1718 = vmatmul.mubr.msk.f32.gmra.mrb[30].mxu1 %vm749_vm6, %v541_v13  ;;  %v646_v13 = vld [vmem:[%s2261_s28 + $0x390] sm:$0xff] }
  0x85   : > { %1720 = vmatprep.mubr.msk.f32.mxu1 %vm2076_vm5, %v2075_v41 }
  0x86   : > { %965 = vmatmul.mubr.f32.gmra.mrb[38].mxu0 %v597_v15  ;;  %v569_v15 = vld [vmem:[%s2261_s28 + $0x128] sm:$0xff] }
  0x87   : > { %969 = vmatprep.mubr.f32.mxu0 %v603_v17  ;;  %1890 = vmatpush1.bf16.msra.mxu0 %v2398_v37  ;;  %v556_v37 = vld [vmem:[%s2261_s28 + $0xc0] sm:$0xff]  ;;  %v575_v17 = vld [vmem:[%s2261_s28 + $0x158] sm:$0xff] }
  0x88   : > { %1891 = vmatprep.subr.bf16.mxu0 %v2073_v3  ;;  %1721 = vmatmul.mubr.msk.f32.gmra.mrb[32].mxu1 %vm749_vm6, %v546_v23  ;;  %v651_v23 = vld [vmem:[%s2261_s28 + $0x3b8] sm:$0xff] }
  0x89   : > { %1723 = vmatprep.mubr.msk.f32.mxu1 %vm2076_vm5, %v2075_v41 }
  0x8a   : > { %970 = vmatmul.mubr.f32.gmra.mrb[40].mxu0 %v602_v18  ;;  %v574_v18 = vld [vmem:[%s2261_s28 + $0x150] sm:$0xff] }
  0x8b   : > { %974 = vmatprep.mubr.f32.mxu0 %v608_v19  ;;  %1893 = vmatpush1.bf16.msra.mxu0 %v2415_v43  ;;  %v618_v43 = vld [vmem:[%s2261_s28 + $0x2b0] sm:$0xff]  ;;  %v580_v19 = vld [vmem:[%s2261_s28 + $0x180] sm:$0xff] }
  0x8c   : > { %1894 = vmatprep.subr.bf16.mxu0 %v2073_v3  ;;  %1724 = vmatmul.mubr.msk.f32.gmra.mrb[34].mxu1 %vm749_vm6, %v551_v30  ;;  %v561_v3 = vld [vmem:[%s2261_s28 + $0xe8] sm:$0xff]  ;;  %v656_v30 = vld [vmem:[%s2261_s28 + $0x3e0] sm:$0xff] }
  0x8d   : > { %1726 = vmatprep.mubr.msk.f32.mxu1 %vm2076_vm5, %v2075_v41 }
  0x8e   : > { %975 = vmatmul.mubr.f32.gmra.mrb[42].mxu0 %v607_v20  ;;  %v579_v20 = vld [vmem:[%s2261_s28 + $0x178] sm:$0xff] }
  0x8f   : > { %979 = vmatprep.mubr.f32.mxu0 %v613_v21  ;;  %1896 = vmatpush1.bf16.msra.mxu0 %v2432_v50  ;;  %v566_v50 = vld [vmem:[%s2261_s28 + $0x110] sm:$0xff]  ;;  %v585_v21 = vld [vmem:[%s2261_s28 + $0x1a8] sm:$0xff] }
  0x90   : > { %1727 = vmatmul.mubr.msk.f32.gmra.mrb[36].mxu1 %vm749_vm6, %v556_v37  ;;  %v661_v37 = vld [vmem:[%s2261_s28 + $0x408] sm:$0xff] }
  0x91   : > { %1729 = vmatprep.mubr.msk.f32.mxu1 %vm2076_vm5, %v2075_v41 }
  0x92   : > { %980 = vmatmul.mubr.f32.gmra.mrb[44].mxu0 %v612_v24  ;;  %v1573_v24 = vld [vmem:[%s2897_s2] ss:$0 sm:$0xff] }
  0x93   : > { %984 = vmatprep.mubr.f32.mxu0 %v618_v43  ;;  %v584_v43 = vld [vmem:[%s2261_s28 + $0x1a0] sm:$0xff] }
  0x94   : > { %1730 = vmatmul.mubr.msk.f32.gmra.mrb[38].mxu1 %vm749_vm6, %v561_v3  ;;  %v590_v3 = vld [vmem:[%s2261_s28 + $0x1d0] sm:$0xff] }
  0x95   : > { %1732 = vmatprep.mubr.msk.f32.mxu1 %vm2076_vm5, %v2075_v41 }
  0x96   : > { %985 = vmatmul.mubr.f32.gmra.mrb[46].mxu0 %v617_v25 }
  0x97   : > { %989 = vmatprep.mubr.f32.mxu0 %v623_v26 }
  0x98   : > { %1733 = vmatmul.mubr.msk.f32.gmra.mrb[40].mxu1 %vm749_vm6, %v566_v50 }
  0x99   : > { %1735 = vmatprep.mubr.msk.f32.mxu1 %vm2076_vm5, %v2075_v41 }
  0x9a   : > { %990 = vmatmul.mubr.f32.gmra.mrb[48].mxu0 %v622_v27  ;;  %v666_v27 = vld [vmem:[%s2261_s28 + $0x430] sm:$0xff] }
  0x9b   : > { %994 = vmatprep.mubr.f32.mxu0 %v628_v29 }
  0x9c   : > { %1736 = vmatmul.mubr.msk.f32.gmra.mrb[42].mxu1 %vm749_vm6, %v571_v4  ;;  %v589_v4 = vld [vmem:[%s2261_s28 + $0x1c8] sm:$0xff] }
  0x9d   : > { %1738 = vmatprep.mubr.msk.f32.mxu1 %vm2076_vm5, %v2075_v41 }
  0x9e   : > { %995 = vmatmul.mubr.f32.gmra.mrb[50].mxu0 %v627_v31 }
  0x9f   : > { %999 = vmatprep.mubr.f32.mxu0 %v633_v32  ;;  %v595_v32 = vld [vmem:[%s2261_s28 + $0x1f8] sm:$0xff] }
  0xa0   : > { %1739 = vmatmul.mubr.msk.f32.gmra.mrb[44].mxu1 %vm749_vm6, %v576_v33 }
  0xa1   : > { %1741 = vmatprep.mubr.msk.f32.mxu1 %vm2076_vm5, %v2075_v41 }
  0xa2   : > { %1000 = vmatmul.mubr.f32.gmra.mrb[52].mxu0 %v632_v34 }
  0xa3   : > { %1004 = vmatprep.mubr.f32.mxu0 %v638_v35 }
  0xa4   : > { %1742 = vmatmul.mubr.msk.f32.gmra.mrb[46].mxu1 %vm749_vm6, %v581_v38 }
  0xa5   : > { %1744 = vmatprep.mubr.msk.f32.mxu1 %vm2076_vm5, %v2075_v41 }
  0xa6   : > { %1005 = vmatmul.mubr.f32.gmra.mrb[54].mxu0 %v637_v39 }
  0xa7   : > { %1009 = vmatprep.mubr.f32.mxu0 %v643_v9 }
  0xa8   : > { %1745 = vmatmul.mubr.msk.f32.gmra.mrb[48].mxu1 %vm749_vm6, %v586_v40 }
  0xa9   : > { %1747 = vmatprep.mubr.msk.f32.mxu1 %vm2076_vm5, %v2075_v41 }
  0xaa   : > { %1010 = vmatmul.mubr.f32.gmra.mrb[56].mxu0 %v642_v42 }
  0xab   : > { %1014 = vmatprep.mubr.f32.mxu0 %v648_v14 }
  0xac   : > { %1748 = vmatmul.mubr.msk.f32.gmra.mrb[50].mxu1 %vm749_vm6, %v591_v44 }
  0xad   : > { %1750 = vmatprep.mubr.msk.f32.mxu1 %vm2076_vm5, %v2075_v41 }
  0xae   : > { %1015 = vmatmul.mubr.f32.gmra.mrb[58].mxu0 %v647_v46 }
  0xaf   : > { %1019 = vmatprep.mubr.f32.mxu0 %v653_v47 }
  0xb0   : > { %1751 = vmatmul.mubr.msk.f32.gmra.mrb[52].mxu1 %vm749_vm6, %v596_v48 }
  0xb1   : > { %1753 = vmatprep.mubr.msk.f32.mxu1 %vm2076_vm5, %v2075_v41 }
  0xb2   : > { %1020 = vmatmul.mubr.f32.gmra.mrb[60].mxu0 %v652_v49 }
  0xb3   : > { %1024 = vmatprep.mubr.f32.mxu0 %v658_v51 }
  0xb4   : > { %1754 = vmatmul.mubr.msk.f32.gmra.mrb[0].mxu1 %vm749_vm6, %v601_v52 }
  0xb5   : > { %1756 = vmatprep.mubr.msk.f32.mxu1 %vm2076_vm5, %v2075_v41 }
  0xb6   : > { %1025 = vmatmul.mubr.f32.gmra.mrb[62].mxu0 %v657_v22 }
  0xb7   : > { %1029 = vmatprep.mubr.f32.mxu0 %v663_v53 }
  0xb8   : > { %1757 = vmatmul.mubr.msk.f32.gmra.mrb[2].mxu1 %vm749_vm6, %v606_v55 }
  0xb9   : > { %1759 = vmatprep.mubr.msk.f32.mxu1 %vm2076_vm5, %v2075_v41 }
  0xba   : > { %1030 = vmatmul.mubr.f32.gmra.mrb[64].mxu0 %v662_v56 }
  0xbb   : > { %1099 = vmatprep.mubr.f32.mxu0 %v535_v28 }
  0xbc   : > { %1760 = vmatmul.mubr.msk.f32.gmra.mrb[4].mxu1 %vm749_vm6, %v611_v57 }
  0xbd   : > { %1762 = vmatprep.mubr.msk.f32.mxu1 %vm2076_vm5, %v2075_v41 }
  0xbe   : > { %1100 = vmatmul.mubr.f32.vlgmr.msra.gmra.mrb[12].mxu0 %v534_v58 }
  0xbf   : > { %1104 = vmatprep.mubr.f32.mxu0 %v540_v59 }
  0xc0   : > { %1763 = vmatmul.mubr.msk.f32.gmra.mrb[6].mxu1 %vm749_vm6, %v616_v36 }
  0xc1   : > { %1765 = vmatprep.mubr.msk.f32.mxu1 %vm2076_vm5, %v2075_v41 }
  0xc2   : > { %1105 = vmatmul.mubr.f32.gmra.mrb[14].mxu0 %v539_v60 }
  0xc3   : > { %1109 = vmatprep.mubr.f32.mxu0 %v545_v61 }
  0xc4   : > { %1766 = vmatmul.mubr.msk.f32.gmra.mrb[8].mxu1 %vm749_vm6, %v621_v63 }
  0xc5   : > { %1768 = vmatprep.mubr.msk.f32.mxu1 %vm2076_vm5, %v2075_v41 }
  0xc6   : > { %1110 = vmatmul.mubr.f32.gmra.mrb[16].mxu0 %v544_v45 }
  0xc7   : > { %1114 = vmatprep.mubr.f32.mxu0 %v550_v0 }
  0xc8   : > { %1769 = vmatmul.mubr.msk.f32.gmra.mrb[10].mxu1 %vm749_vm6, %v626_v1 }
  0xc9   : > { %1771 = vmatprep.mubr.msk.f32.mxu1 %vm2076_vm5, %v2075_v41 }
  0xca   : > { %1115 = vmatmul.mubr.f32.gmra.mrb[18].mxu0 %v549_v2 }
  0xcb   : > { %1119 = vmatprep.mubr.f32.mxu0 %v555_v54 }
  0xcc   : > { %1772 = vmatmul.mubr.msk.f32.gmra.mrb[12].mxu1 %vm749_vm6, %v631_v5 }
  0xcd   : > { %1774 = vmatprep.mubr.msk.f32.mxu1 %vm2076_vm5, %v2075_v41 }
  0xce   : > { %1120 = vmatmul.mubr.f32.gmra.mrb[20].mxu0 %v554_v6 }
  0xcf   : > { %1124 = vmatprep.mubr.f32.mxu0 %v560_v7 }
  0xd0   : > { %1775 = vmatmul.mubr.msk.f32.gmra.mrb[14].mxu1 %vm749_vm6, %v636_v62 }
  0xd1   : > { %1777 = vmatprep.mubr.msk.f32.mxu1 %vm2076_vm5, %v2075_v41 }
  0xd2   : > { %1125 = vmatmul.mubr.f32.gmra.mrb[22].mxu0 %v559_v10 }
  0xd3   : > { %1129 = vmatprep.mubr.f32.mxu0 %v565_v11 }
  0xd4   : > { %1778 = vmatmul.mubr.msk.f32.gmra.mrb[16].mxu1 %vm749_vm6, %v641_v8 }
  0xd5   : > { %1780 = vmatprep.mubr.msk.f32.mxu1 %vm2076_vm5, %v2075_v41 }
  0xd6   : > { %1130 = vmatmul.mubr.f32.gmra.mrb[24].mxu0 %v564_v12 }
  0xd7   : > { %1134 = vmatprep.mubr.f32.mxu0 %v570_v16 }
  0xd8   : > { %1781 = vmatmul.mubr.msk.f32.gmra.mrb[18].mxu1 %vm749_vm6, %v646_v13 }
  0xd9   : > { %1783 = vmatprep.mubr.msk.f32.mxu1 %vm2076_vm5, %v2075_v41 }
  0xda   : > { %1135 = vmatmul.mubr.f32.gmra.mrb[26].mxu0 %v569_v15 }
  0xdb   : > { %1139 = vmatprep.mubr.f32.mxu0 %v575_v17 }
  0xdc   : > { %1784 = vmatmul.mubr.msk.f32.gmra.mrb[20].mxu1 %vm749_vm6, %v651_v23 }
  0xdd   : > { %1786 = vmatprep.mubr.msk.f32.mxu1 %vm2076_vm5, %v2075_v41 }
  0xde   : > { %1140 = vmatmul.mubr.f32.gmra.mrb[28].mxu0 %v574_v18 }
  0xdf   : > { %1144 = vmatprep.mubr.f32.mxu0 %v580_v19 }
  0xe0   : > { %1787 = vmatmul.mubr.msk.f32.gmra.mrb[22].mxu1 %vm749_vm6, %v656_v30 }
  0xe1   : > { %1789 = vmatprep.mubr.msk.f32.mxu1 %vm2076_vm5, %v2075_v41 }
  0xe2   : > { %1145 = vmatmul.mubr.f32.gmra.mrb[30].mxu0 %v579_v20 }
  0xe3   : > { %1149 = vmatprep.mubr.f32.mxu0 %v585_v21 }
  0xe4   : > { %1790 = vmatmul.mubr.msk.f32.gmra.mrb[24].mxu1 %vm749_vm6, %v661_v37 }
  0xe5   : > { %v1676_v25 = vpop.f32.mrb[0].mxu0  ;;  %1792 = vmatprep.mubr.msk.f32.mxu1 %vm2076_vm5, %v2075_v41  ;;  %v594_v41 = vld [vmem:[%s2261_s28 + $0x1f0] sm:$0xff]  ;;  %s1572_s28 = sshll.u32 %s2906_s20, 3 }
  0xe6   : > { %v455_v26 = vadd.f32 %v1676_v25, %v1573_v24  ;;  %1150 = vmatmul.mubr.f32.gmra.mrb[32].mxu0 %v584_v43  ;;  %v449_v50 = vpop.f32.mrb[1].mxu0  ;;  %s2810_s9 = scalar_lea.vmem %s2902_s7, %s1572_s28 }
  0xe7   : > { %v450_v29 = vadd.f32 %v1573_v24, %v449_v50  ;;  %1154 = vmatprep.mubr.f32.mxu0 %v590_v3 }
  0xe8   : > { %v509_v31 = vmul.f32 0.578, %v455_v26  ;;  %1793 = vmatmul.mubr.msk.f32.gmra.mrb[26].mxu1 %vm749_vm6, %v666_v27 }
  0xe9   : > { %v508_v33 = vmul.f32 0.578, %v450_v29  ;;  %v1679_v34 = vpop.f32.mrb[2].mxu0 }
  0xea   : > { %521 = vst [vmem:[%s2740_s27 + $0x8] sm:$0xff] %v509_v31  ;;  %1155 = vmatmul.mubr.f32.gmra.mrb[34].mxu0 %v589_v4  ;;  %v465_v35 = vadd.f32 %v1679_v34, %v1573_v24  ;;  %v459_v38 = vpop.f32.mrb[3].mxu0 }
  0xeb   : > { %520 = vst [vmem:[%s2740_s27] sm:$0xff] %v508_v33  ;;  %1159 = vmatprep.mubr.f32.mxu0 %v595_v32  ;;  %v460_v39 = vadd.f32 %v1573_v24, %v459_v38 }
  0xec   : > { %v511_v9 = vmul.f32 0.578, %v465_v35 }
  0xed   : > { %v510_v40 = vmul.f32 0.578, %v460_v39  ;;  %v1682_v42 = vpop.f32.mrb[4].mxu0 }
  0xee   : > { %1160 = vmatmul.mubr.f32.gmra.mrb[36].mxu0 %v594_v41  ;;  %523 = vst [vmem:[%s2740_s27 + $0x18] sm:$0xff] %v511_v9  ;;  %v475_v14 = vadd.f32 %v1682_v42, %v1573_v24  ;;  %v469_v44 = vpop.f32.mrb[5].mxu0 }
  0xef   : > { %522 = vst [vmem:[%s2740_s27 + $0x10] sm:$0xff] %v510_v40  ;;  %v470_v46 = vadd.f32 %v1573_v24, %v469_v44 }
  0xf0   : > { %v513_v47 = vmul.f32 0.578, %v475_v14 }
  0xf1   : > { %v512_v48 = vmul.f32 0.578, %v470_v46  ;;  %v1685_v49 = vpop.f32.mrb[6].mxu0 }
  0xf2   : > { %525 = vst [vmem:[%s2740_s27 + $0x28] sm:$0xff] %v513_v47  ;;  %v485_v51 = vadd.f32 %v1685_v49, %v1573_v24  ;;  %v479_v52 = vpop.f32.mrb[7].mxu0  ;;  %v2799_v49 = vld [vmem:[%s2900_s5] ss:$0 sm:$0xff] }
  0xf3   : > { %524 = vst [vmem:[%s2740_s27 + $0x20] sm:$0xff] %v512_v48  ;;  %v480_v22 = vadd.f32 %v1573_v24, %v479_v52 }
  0xf4   : > { %v515_v53 = vmul.f32 0.578, %v485_v51 }
  0xf5   : > { %v514_v55 = vmul.f32 0.578, %v480_v22  ;;  %v1688_v56 = vpop.f32.mrb[8].mxu0 }
  0xf6   : > { %527 = vst [vmem:[%s2740_s27 + $0x38] sm:$0xff] %v515_v53  ;;  %v495_v28 = vadd.f32 %v1688_v56, %v1573_v24  ;;  %v489_v57 = vpop.f32.mrb[9].mxu0 }
  0xf7   : > { %526 = vst [vmem:[%s2740_s27 + $0x30] sm:$0xff] %v514_v55  ;;  %v490_v58 = vadd.f32 %v1573_v24, %v489_v57 }
  0xf8   : > { %v517_v59 = vmul.f32 0.578, %v495_v28 }
  0xf9   : > { %v516_v36 = vmul.f32 0.578, %v490_v58  ;;  %v1691_v60 = vpop.f32.mrb[10].mxu0 }
  0xfa   : > { %529 = vst [vmem:[%s2740_s27 + $0x48] sm:$0xff] %v517_v59  ;;  %v505_v61 = vadd.f32 %v1691_v60, %v1573_v24  ;;  %v499_v63 = vpop.f32.mrb[11].mxu0 }
  0xfb   : > { %528 = vst [vmem:[%s2740_s27 + $0x40] sm:$0xff] %v516_v36  ;;  %v500_v45 = vadd.f32 %v1573_v24, %v499_v63 }
  0xfc   : > { %v519_v0 = vmul.f32 0.578, %v505_v61 }
  0xfd   : > { %v518_v1 = vmul.f32 0.578, %v500_v45 }
  0xfe   : > { %531 = vst [vmem:[%s2740_s27 + $0x58] sm:$0xff] %v519_v0 }
  0xff   : > { %530 = vst [vmem:[%s2740_s27 + $0x50] sm:$0xff] %v518_v1 }
 0x153   : > { %v2758_v2 = vpop.f32.mrb[28].mxu1 }
 0x154   : > { %v1716_v54 = vpop.f32.mrb[29].mxu1 }
 0x157   : > { %v2760_v5 = vpop.f32.mrb[30].mxu1 }
 0x158   : > { %v1719_v7 = vpop.f32.mrb[31].mxu1 }
 0x159   : > { %v966_v6 = vpop.f32.mrb[38].mxu0 }
 0x15a   : > { %v968_v62 = vpop.f32.mrb[39].mxu0  ;;  %v967_v55 = vadd.f32 %v2799_v49, %v966_v6 }
 0x15b   : > { %v2762_v10 = vpop.f32.mrb[32].mxu1 }
 0x15c   : > { %v1722_v8 = vpop.f32.mrb[33].mxu1 }
 0x15d   : > { %v971_v11 = vpop.f32.mrb[40].mxu0 }
 0x15e   : > { %v973_v12 = vpop.f32.mrb[41].mxu0  ;;  %v972_v36 = vadd.f32 %v2799_v49, %v971_v11 }
 0x15f   : > { %v2764_v16 = vpop.f32.mrb[34].mxu1 }
 0x160   : > { %v1725_v15 = vpop.f32.mrb[35].mxu1 }
 0x161   : > { %v976_v13 = vpop.f32.mrb[42].mxu0 }
 0x162   : > { %v978_v17 = vpop.f32.mrb[43].mxu0  ;;  %v977_v1 = vadd.f32 %v2799_v49, %v976_v13 }
 0x163   : > { %v2766_v23 = vpop.f32.mrb[36].mxu1 }
 0x164   : > { %v1728_v19 = vpop.f32.mrb[37].mxu1 }
 0x165   : > { %v981_v18 = vpop.f32.mrb[44].mxu0 }
 0x166   : > { %v983_v30 = vpop.f32.mrb[45].mxu0  ;;  %v982_v12 = vadd.f32 %v2799_v49, %v981_v18 }
 0x167   : > { %v2768_v20 = vpop.f32.mrb[38].mxu1 }
 0x168   : > { %v1731_v37 = vpop.f32.mrb[39].mxu1 }
 0x169   : > { %v2770_v21 = vpop.f32.mrb[46].mxu0 }
 0x16a   : > { %v988_v24 = vpop.f32.mrb[47].mxu0 }
 0x16b   : > { %v2772_v43 = vpop.f32.mrb[40].mxu1 }
 0x16c   : > { %v1734_v25 = vpop.f32.mrb[41].mxu1 }
 0x16d   : > { %v2774_v3 = vpop.f32.mrb[48].mxu0  ;;  %v987_v25 = vadd.f32 %v2799_v49, %v2770_v21 }
 0x16e   : > { %v993_v26 = vpop.f32.mrb[49].mxu0 }
 0x16f   : > { %v2776_v50 = vpop.f32.mrb[42].mxu1 }
 0x170   : > { %v1737_v29 = vpop.f32.mrb[43].mxu1 }
 0x171   : > { %v2778_v27 = vpop.f32.mrb[50].mxu0 }
 0x172   : > { %v998_v4 = vpop.f32.mrb[51].mxu0 }
 0x173   : > { %v2780_v31 = vpop.f32.mrb[44].mxu1 }
 0x174   : > { %v1740_v33 = vpop.f32.mrb[45].mxu1 }
 0x175   : > { %v2782_v32 = vpop.f32.mrb[52].mxu0 }
 0x176   : > { %v1003_v41 = vpop.f32.mrb[53].mxu0 }
 0x177   : > { %v2784_v34 = vpop.f32.mrb[46].mxu1 }
 0x178   : > { %v1743_v38 = vpop.f32.mrb[47].mxu1 }
 0x179   : > { %v2786_v35 = vpop.f32.mrb[54].mxu0  ;;  %v992_v38 = vadd.f32 %v2799_v49, %v2774_v3 }
 0x17a   : > { %v1008_v39 = vpop.f32.mrb[55].mxu0 }
 0x17b   : > { %v2788_v9 = vpop.f32.mrb[48].mxu1 }
 0x17c   : > { %v1746_v42 = vpop.f32.mrb[49].mxu1 }
 0x17d   : > { %v2790_v40 = vpop.f32.mrb[56].mxu0 }
 0x17e   : > { %v1013_v14 = vpop.f32.mrb[57].mxu0 }
 0x17f   : > { %v2792_v44 = vpop.f32.mrb[50].mxu1 }
 0x180   : > { %v1749_v47 = vpop.f32.mrb[51].mxu1 }
 0x181   : > { %v2794_v46 = vpop.f32.mrb[58].mxu0 }
 0x182   : > { %v1018_v48 = vpop.f32.mrb[59].mxu0 }
 0x183   : > { %v2801_v51 = vpop.f32.mrb[52].mxu1 }
 0x184   : > { %v1752_v22 = vpop.f32.mrb[53].mxu1 }
 0x185   : > { %v2803_v52 = vpop.f32.mrb[60].mxu0  ;;  %v997_v22 = vadd.f32 %v2799_v49, %v2778_v27 }
 0x186   : > { %v1023_v53 = vpop.f32.mrb[61].mxu0 }
 0x187   : > { %v1366_v56 = vpop.f32.mrb[0].mxu1 }
 0x188   : > { %v1971_v57 = vadd.f32 %v1366_v56, %v967_v55  ;;  %v1755_v58 = vpop.f32.mrb[1].mxu1 }
 0x189   : > { %v2812_v28 = vpop.f32.mrb[62].mxu0 }
 0x18a   : > { %v1028_v59 = vpop.f32.mrb[63].mxu0  ;;  %1448 = vst [vmem:[%s2810_s9 + $0x68] sm:$0xff] %v1971_v57 }
 0x18b   : > { %v1371_v60 = vpop.f32.mrb[2].mxu1  ;;  %v1002_v59 = vadd.f32 %v2799_v49, %v2782_v32 }
 0x18c   : > { %v1973_v63 = vadd.f32 %v1371_v60, %v972_v36  ;;  %v1758_v45 = vpop.f32.mrb[3].mxu1 }
 0x18d   : > { %v2816_v61 = vpop.f32.mrb[64].mxu0 }
 0x18e   : > { %v1033_v0 = vpop.f32.mrb[65].mxu0  ;;  %1449 = vst [vmem:[%s2810_s9 + $0x70] sm:$0xff] %v1973_v63 }
 0x18f   : > { %v1376_v54 = vpop.f32.mrb[4].mxu1 }
 0x190   : > { %v1975_v7 = vadd.f32 %v1376_v54, %v977_v1  ;;  %v1761_v62 = vpop.f32.mrb[5].mxu1  ;;  %v1007_v1 = vadd.f32 %v2799_v49, %v2786_v35 }
 0x191   : > { %v1101_v6 = vpop.f32.mrb[12].mxu0 }
 0x192   : > { %v1944_v8 = vadd.f32 %v2799_v49, %v1101_v6  ;;  %v1103_v11 = vpop.f32.mrb[13].mxu0  ;;  %1450 = vst [vmem:[%s2810_s9 + $0x78] sm:$0xff] %v1975_v7 }
 0x193   : > { %v1381_v17 = vpop.f32.mrb[6].mxu1  ;;  %v1012_v11 = vadd.f32 %v2799_v49, %v2790_v40 }
 0x194   : > { %v1945_v15 = vadd.f32 %v1944_v8, %v2758_v2  ;;  %v1977_v30 = vadd.f32 %v1381_v17, %v982_v12  ;;  %v1764_v13 = vpop.f32.mrb[7].mxu1 }
 0x195   : > { %v1106_v19 = vpop.f32.mrb[14].mxu0  ;;  %v1017_v13 = vadd.f32 %v2799_v49, %v2794_v46 }
 0x196   : > { %1435 = vst [vmem:[%s2810_s9] sm:$0xff] %v1945_v15  ;;  %v1946_v37 = vadd.f32 %v2799_v49, %v1106_v19  ;;  %v1108_v24 = vpop.f32.mrb[15].mxu0  ;;  %1451 = vst [vmem:[%s2810_s9 + $0x80] sm:$0xff] %v1977_v30 }
 0x197   : > { %v1386_v26 = vpop.f32.mrb[8].mxu1 }
 0x198   : > { %v1947_v18 = vadd.f32 %v1946_v37, %v2760_v5  ;;  %v1979_v4 = vadd.f32 %v1386_v26, %v987_v25  ;;  %v1767_v2 = vpop.f32.mrb[9].mxu1 }
 0x199   : > { %v1111_v29 = vpop.f32.mrb[16].mxu0 }
 0x19a   : > { %1436 = vst [vmem:[%s2810_s9 + $0x8] sm:$0xff] %v1947_v18  ;;  %v1948_v33 = vadd.f32 %v2799_v49, %v1111_v29  ;;  %v1113_v41 = vpop.f32.mrb[17].mxu0  ;;  %1452 = vst [vmem:[%s2810_s9 + $0x88] sm:$0xff] %v1979_v4  ;;  %v1022_v29 = vadd.f32 %v2799_v49, %v2803_v52 }
 0x19b   : > { %v1391_v39 = vpop.f32.mrb[10].mxu1 }
 0x19c   : > { %v1949_v21 = vadd.f32 %v1948_v33, %v2762_v10  ;;  %v1981_v14 = vadd.f32 %v1391_v39, %v992_v38  ;;  %v1770_v5 = vpop.f32.mrb[11].mxu1 }
 0x19d   : > { %v1116_v42 = vpop.f32.mrb[18].mxu0 }
 0x19e   : > { %1437 = vst [vmem:[%s2810_s9 + $0x10] sm:$0xff] %v1949_v21  ;;  %v1950_v47 = vadd.f32 %v2799_v49, %v1116_v42  ;;  %v1118_v48 = vpop.f32.mrb[19].mxu0  ;;  %1453 = vst [vmem:[%s2810_s9 + $0x90] sm:$0xff] %v1981_v14  ;;  %v1027_v21 = vadd.f32 %v2799_v49, %v2812_v28 }
 0x19f   : > { %v1396_v53 = vpop.f32.mrb[12].mxu1  ;;  %v1032_v48 = vadd.f32 %v2799_v49, %v2816_v61 }
 0x1a0   : > { %v1951_v3 = vadd.f32 %v1950_v47, %v2764_v16  ;;  %v1983_v56 = vadd.f32 %v1396_v53, %v997_v22  ;;  %v1773_v10 = vpop.f32.mrb[13].mxu1 }
 0x1a1   : > { %v1121_v55 = vpop.f32.mrb[20].mxu0 }
 0x1a2   : > { %1438 = vst [vmem:[%s2810_s9 + $0x18] sm:$0xff] %v1951_v3  ;;  %v1952_v57 = vadd.f32 %v2799_v49, %v1121_v55  ;;  %v1123_v58 = vpop.f32.mrb[21].mxu0  ;;  %1454 = vst [vmem:[%s2810_s9 + $0x98] sm:$0xff] %v1983_v56 }
 0x1a3   : > { %v1401_v36 = vpop.f32.mrb[14].mxu1 }
 0x1a4   : > { %v1953_v27 = vadd.f32 %v1952_v57, %v2766_v23  ;;  %v1985_v63 = vadd.f32 %v1401_v36, %v1002_v59  ;;  %v1776_v16 = vpop.f32.mrb[15].mxu1 }
 0x1a5   : > { %v1126_v60 = vpop.f32.mrb[22].mxu0 }
 0x1a6   : > { %1439 = vst [vmem:[%s2810_s9 + $0x20] sm:$0xff] %v1953_v27  ;;  %v1954_v45 = vadd.f32 %v2799_v49, %v1126_v60  ;;  %v1128_v0 = vpop.f32.mrb[23].mxu0  ;;  %1455 = vst [vmem:[%s2810_s9 + $0xa0] sm:$0xff] %v1985_v63 }
 0x1a7   : > { %v1406_v54 = vpop.f32.mrb[16].mxu1 }
 0x1a8   : > { %v1955_v32 = vadd.f32 %v1954_v45, %v2768_v20  ;;  %v1987_v7 = vadd.f32 %v1406_v54, %v1007_v1  ;;  %v1779_v23 = vpop.f32.mrb[17].mxu1 }
 0x1a9   : > { %v1131_v6 = vpop.f32.mrb[24].mxu0 }
 0x1aa   : > { %1440 = vst [vmem:[%s2810_s9 + $0x28] sm:$0xff] %v1955_v32  ;;  %v1956_v62 = vadd.f32 %v2799_v49, %v1131_v6  ;;  %v1133_v8 = vpop.f32.mrb[25].mxu0  ;;  %1456 = vst [vmem:[%s2810_s9 + $0xa8] sm:$0xff] %v1987_v7 }
 0x1ab   : > { %v1411_v12 = vpop.f32.mrb[18].mxu1 }
 0x1ac   : > { %v1957_v35 = vadd.f32 %v1956_v62, %v2772_v43  ;;  %v1989_v17 = vadd.f32 %v1411_v12, %v1012_v11  ;;  %v1782_v20 = vpop.f32.mrb[19].mxu1 }
 0x1ad   : > { %v1136_v15 = vpop.f32.mrb[26].mxu0 }
 0x1ae   : > { %1441 = vst [vmem:[%s2810_s9 + $0x30] sm:$0xff] %v1957_v35  ;;  %v1958_v19 = vadd.f32 %v2799_v49, %v1136_v15  ;;  %v1138_v30 = vpop.f32.mrb[27].mxu0  ;;  %1457 = vst [vmem:[%s2810_s9 + $0xb0] sm:$0xff] %v1989_v17 }
 0x1af   : > { %v1416_v37 = vpop.f32.mrb[20].mxu1 }
 0x1b0   : > { %v1959_v40 = vadd.f32 %v1958_v19, %v2776_v50  ;;  %v1991_v25 = vadd.f32 %v1416_v37, %v1017_v13  ;;  %v1785_v43 = vpop.f32.mrb[21].mxu1 }
 0x1b1   : > { %v1141_v24 = vpop.f32.mrb[28].mxu0 }
 0x1b2   : > { %1442 = vst [vmem:[%s2810_s9 + $0x38] sm:$0xff] %v1959_v40  ;;  %v1960_v18 = vadd.f32 %v2799_v49, %v1141_v24  ;;  %v1143_v26 = vpop.f32.mrb[29].mxu0  ;;  %1458 = vst [vmem:[%s2810_s9 + $0xb8] sm:$0xff] %v1991_v25 }
 0x1b3   : > { %v1421_v4 = vpop.f32.mrb[22].mxu1 }
 0x1b4   : > { %v1961_v46 = vadd.f32 %v1960_v18, %v2780_v31  ;;  %v1993_v33 = vadd.f32 %v1421_v4, %v1022_v29  ;;  %v1788_v50 = vpop.f32.mrb[23].mxu1 }
 0x1b5   : > { %v1146_v2 = vpop.f32.mrb[30].mxu0 }
 0x1b6   : > { %1443 = vst [vmem:[%s2810_s9 + $0x40] sm:$0xff] %v1961_v46  ;;  %v1962_v41 = vadd.f32 %v2799_v49, %v1146_v2  ;;  %v1148_v38 = vpop.f32.mrb[31].mxu0  ;;  %1459 = vst [vmem:[%s2810_s9 + $0xc0] sm:$0xff] %v1993_v33 }
 0x1b7   : > { %v1426_v39 = vpop.f32.mrb[24].mxu1 }
 0x1b8   : > { %v1963_v52 = vadd.f32 %v1962_v41, %v2784_v34  ;;  %v1995_v31 = vadd.f32 %v1426_v39, %v1027_v21  ;;  %v1791_v14 = vpop.f32.mrb[25].mxu1 }
 0x1b9   : > { %v1151_v42 = vpop.f32.mrb[32].mxu0 }
 0x1ba   : > { %1444 = vst [vmem:[%s2810_s9 + $0x48] sm:$0xff] %v1963_v52  ;;  %v1964_v5 = vadd.f32 %v2799_v49, %v1151_v42  ;;  %v1153_v47 = vpop.f32.mrb[33].mxu0  ;;  %1460 = vst [vmem:[%s2810_s9 + $0xc8] sm:$0xff] %v1995_v31 }
 0x1bb   : > { %v1431_v22 = vpop.f32.mrb[26].mxu1 }
 0x1bc   : > { %v1965_v28 = vadd.f32 %v1964_v5, %v2788_v9  ;;  %v1997_v34 = vadd.f32 %v1431_v22, %v1032_v48  ;;  %v1794_v53 = vpop.f32.mrb[27].mxu1 }
 0x1bd   : > { %v1156_v3 = vpop.f32.mrb[34].mxu0 }
 0x1be   : > { %1445 = vst [vmem:[%s2810_s9 + $0x50] sm:$0xff] %v1965_v28  ;;  %v1966_v55 = vadd.f32 %v2799_v49, %v1156_v3  ;;  %v1158_v56 = vpop.f32.mrb[35].mxu0  ;;  %1461 = vst [vmem:[%s2810_s9 + $0xd0] sm:$0xff] %v1997_v34 }
 0x1c0   : > { %v1967_v10 = vadd.f32 %v1966_v55, %v2792_v44 }
 0x1c1   : > { %v1161_v57 = vpop.f32.mrb[36].mxu0 }
 0x1c2   : > { %1446 = vst [vmem:[%s2810_s9 + $0x58] sm:$0xff] %v1967_v10  ;;  %v1968_v58 = vadd.f32 %v2799_v49, %v1161_v57  ;;  %v1163_v61 = vpop.f32.mrb[37].mxu0 }
 0x1c4   : > { %v1969_v59 = vadd.f32 %v1968_v58, %v2801_v51 }
 0x1c6   : > { %1447 = vst [vmem:[%s2810_s9 + $0x60] sm:$0xff] %v1969_v59 }
 0x1c7 PF: > { %s18_s24 = sadd.s32 1, %s2071_s24  }
 0x1c8   : > { %p15_p5 = scmp.ge.s32.totalorder %s18_s24, 4  }
 0x1ca   :  { %17 = sbr.rel (!%p15_p5) target bundleno = 1 (0x1), region = 89 }

</bundles_post_ra>
